<compile_context>
chip_gen: v7x
topology: tpu7x:2x2x1
jax: 0.10.0
libtpu: 0.0.40
codegen_flags: <defaults>
</compile_context>

<pallas_src>
import functools

import jax
import jax.numpy as jnp
from jax.experimental import pallas as pl
from jax.experimental.pallas import tpu as pltpu


def _round_up(x, m):
    return ((x + m - 1) // m) * m


# ----------------------------- Pallas kernels -----------------------------

def _conv_stats_kernel(p_ref, w_ref, o_ref, s_ref, ss_ref, acc_ref):
    """Tiled matmul (im2col conv) + fused per-tile channel sum / sumsq.

    p_ref:  (tm, tk)      bf16 patch tile
    w_ref:  (tk, C_pad)   bf16 weight tile
    o_ref:  (tm, C_pad)   f32 conv output tile
    s_ref:  (8,  C_pad)   f32 per-tile channel sums (broadcast over 8 sublanes)
    ss_ref: (8,  C_pad)   f32 per-tile channel sum-of-squares
    acc_ref:(tm, C_pad)   f32 accumulator scratch (persists across the K grid axis)
    """
    k = pl.program_id(1)

    @pl.when(k == 0)
    def _():
        acc_ref[...] = jnp.zeros_like(acc_ref)

    acc_ref[...] += jnp.dot(p_ref[...], w_ref[...],
                            preferred_element_type=jnp.float32)

    @pl.when(k == pl.num_programs(1) - 1)
    def _():
        acc = acc_ref[...]
        o_ref[...] = acc
        c = acc.shape[1]
        s = jnp.sum(acc, axis=0, keepdims=True)            # (1, C_pad)
        ss = jnp.sum(acc * acc, axis=0, keepdims=True)     # (1, C_pad)
        s_ref[...] = jnp.broadcast_to(s, (8, c))
        ss_ref[...] = jnp.broadcast_to(ss, (8, c))


def _bn_act_kernel(x_ref, scale_ref, shift_ref, out_ref, act_ref, *, slope):
    """Normalize with precomputed per-channel scale/shift, then LeakyReLU."""
    y = x_ref[...] * scale_ref[...] + shift_ref[...]
    out_ref[...] = y
    act_ref[...] = jnp.where(y > 0, y, slope * y)


# ------------------------------- wrapper ----------------------------------

def unet_conv_forward(x, w, b, gamma, beta, *, stride=2, eps=1e-5, slope=0.2,
                      tm=512, max_tk=512, matmul_dtype=jnp.bfloat16):
    """x: (N, Cin, H, W) f32. Returns (bn_out, act), both (N, Cout, OH, OW) f32.

    `b` (conv bias) is accepted for API parity but mathematically cancels under
    training-mode BatchNorm (mean subtraction), so it is not used.
    """
    del b  # exactly cancelled by BN mean subtraction; returned tensors unaffected
    N, Cin, H, W = x.shape
    Cout = w.shape[0]
    KH = KW = 3
    pad = 1
    OH = (H + 2 * pad - KH) // stride + 1
    OW = (W + 2 * pad - KW) // stride + 1

    # ---- glue: NCHW -> NHWC, pad, im2col (kh, kw, ci) ordering, bf16 stream ----
    x_nhwc = jnp.transpose(x, (0, 2, 3, 1)).astype(matmul_dtype)
    x_pad = jnp.pad(x_nhwc, ((0, 0), (pad, pad), (pad, pad), (0, 0)))
    cols = []
    for kh in range(KH):
        for kw in range(KW):
            cols.append(
                x_pad[:,
                      kh: kh + (OH - 1) * stride + 1: stride,
                      kw: kw + (OW - 1) * stride + 1: stride,
                      :])
    K = KH * KW * Cin
    M = N * OH * OW
    patches = jnp.concatenate(cols, axis=-1).reshape(M, K)   # bf16 im2col

    # ---- tiling / padding (lane & sublane aligned) ----
    tm = min(tm, _round_up(M, 8))
    Mp = _round_up(M, tm)
    C_pad = _round_up(Cout, 128)                 # lane-dense output channel dim
    tk = min(max_tk, _round_up(K, 128))
    Kp = _round_up(K, tk)
    Gm, Gk = Mp // tm, Kp // tk

    # zero padding: padded rows/cols contribute exactly 0 to conv and to the BN sums
    patches = jnp.pad(patches, ((0, Mp - M), (0, Kp - K)))

    # weight (Cout, Cin, KH, KW) -> (KH, KW, Cin, Cout) -> (K, Cout), zero-pad to (Kp, C_pad)
    w2 = jnp.transpose(w, (2, 3, 1, 0)).reshape(K, Cout).astype(matmul_dtype)
    w2 = jnp.pad(w2, ((0, Kp - K), (0, C_pad - Cout)))

    isz = jnp.dtype(matmul_dtype).itemsize
    cost = pl.CostEstimate(
        flops=2 * Mp * Kp * C_pad,
        transcendentals=0,
        bytes_accessed=Mp * Kp * isz + Kp * C_pad * isz
        + Mp * C_pad * 4 + 2 * Gm * 8 * C_pad * 4)

    vmem_limit = 64 * 1024 * 1024

    # ---- kernel 1: conv matmul + fused BN partial statistics ----
    conv_flat, psum, psumsq = pl.pallas_call(
        _conv_stats_kernel,
        out_shape=(
            jax.ShapeDtypeStruct((Mp, C_pad), jnp.float32),
            jax.ShapeDtypeStruct((Gm * 8, C_pad), jnp.float32),
            jax.ShapeDtypeStruct((Gm * 8, C_pad), jnp.float32),
        ),
        grid_spec=pltpu.PrefetchScalarGridSpec(
            num_scalar_prefetch=0,
            grid=(Gm, Gk),
            in_specs=[
                pl.BlockSpec((tm, tk), lambda i, k: (i, k)),
                pl.BlockSpec((tk, C_pad), lambda i, k: (k, 0)),
            ],
            out_specs=(
                pl.BlockSpec((tm, C_pad), lambda i, k: (i, 0)),
                pl.BlockSpec((8, C_pad), lambda i, k: (i, 0)),
                pl.BlockSpec((8, C_pad), lambda i, k: (i, 0)),
            ),
            scratch_shapes=[pltpu.VMEM((tm, C_pad), jnp.float32)],
        ),
        compiler_params=pltpu.CompilerParams(
            dimension_semantics=("parallel", "arbitrary"),
            vmem_limit_bytes=vmem_limit),
        cost_estimate=cost,
    )(patches, w2)

    # ---- tiny XLA finalize: batch-stats -> per-channel scale/shift (f32) ----
    # Each tile wrote its sums broadcast over 8 sublanes; take one row per tile.
    tile_sums = psum.reshape(Gm, 8, C_pad)[:, 0, :]
    tile_sqs = psumsq.reshape(Gm, 8, C_pad)[:, 0, :]
    inv_m = 1.0 / float(M)
    mean = jnp.sum(tile_sums, axis=0, keepdims=True) * inv_m       # (1, C_pad)
    ex2 = jnp.sum(tile_sqs, axis=0, keepdims=True) * inv_m
    var = jnp.maximum(ex2 - mean * mean, 0.0)                      # biased var (BN training)
    gamma_p = jnp.pad(gamma.astype(jnp.float32).reshape(1, Cout),
                      ((0, 0), (0, C_pad - Cout)))
    beta_p = jnp.pad(beta.astype(jnp.float32).reshape(1, Cout),
                     ((0, 0), (0, C_pad - Cout)))
    scale = gamma_p * jax.lax.rsqrt(var + eps)
    shift = beta_p - mean * scale

    # ---- kernel 2: tiled normalize + LeakyReLU ----
    out_flat, act_flat = pl.pallas_call(
        functools.partial(_bn_act_kernel, slope=slope),
        out_shape=(
            jax.ShapeDtypeStruct((Mp, C_pad), jnp.float32),
            jax.ShapeDtypeStruct((Mp, C_pad), jnp.float32),
        ),
        grid=(Gm,),
        in_specs=[
            pl.BlockSpec((tm, C_pad), lambda i: (i, 0)),
            pl.BlockSpec((1, C_pad), lambda i: (0, 0)),
            pl.BlockSpec((1, C_pad), lambda i: (0, 0)),
        ],
        out_specs=(
            pl.BlockSpec((tm, C_pad), lambda i: (i, 0)),
            pl.BlockSpec((tm, C_pad), lambda i: (i, 0)),
        ),
        compiler_params=pltpu.CompilerParams(
            dimension_semantics=("parallel",),
            vmem_limit_bytes=vmem_limit),
    )(conv_flat, scale, shift)

    # ---- glue: slice off padding, back to NCHW (pure XLA layout shuffle) ----
    def to_nchw(flat):
        return jnp.transpose(flat[:M, :Cout].reshape(N, OH, OW, Cout),
                             (0, 3, 1, 2))

    return to_nchw(out_flat), to_nchw(act_flat)


# ----------------------------- reference (plain JAX) -----------------------

def unet_conv_reference(x, w, b, gamma, beta, *, stride=2, eps=1e-5, slope=0.2,
                        cast_dtype=None):
    xc, wc = x, w
    if cast_dtype is not None:  # mimic the kernel's mixed-precision matmul inputs
        xc = x.astype(cast_dtype).astype(jnp.float32)
        wc = w.astype(cast_dtype).astype(jnp.float32)
    conv = jax.lax.conv_general_dilated(
        xc, wc, window_strides=(stride, stride), padding=((1, 1), (1, 1)),
        dimension_numbers=("NCHW", "OIHW", "NCHW"))
    conv = conv + b[None, :, None, None]
    mean = conv.mean(axis=(0, 2, 3), keepdims=True)
    var = ((conv - mean) ** 2).mean(axis=(0, 2, 3), keepdims=True)  # biased
    out = (conv - mean) * jax.lax.rsqrt(var + eps) * gamma[None, :, None, None] \
        + beta[None, :, None, None]
    act = jnp.where(out > 0, out, slope * out)
    return out, act


# TODO(synk): BatchNorm running_mean/running_var buffer updates (training-time
# side effect in PyTorch) are not modeled; only the returned tensors are.

if __name__ == "__main__":
    key = jax.random.PRNGKey(0)
    k1, k2, k3, k4, k5 = jax.random.split(key, 5)

    N, Cin, H, W = 2, 4, 16, 16
    Cout, stride = 8, 2

    x = jax.random.normal(k1, (N, Cin, H, W), dtype=jnp.float32)
    fan_in = Cin * 3 * 3
    bound = 1.0 / (fan_in ** 0.5)
    w = jax.random.uniform(k2, (Cout, Cin, 3, 3), jnp.float32, -bound, bound)
    b = jax.random.uniform(k3, (Cout,), jnp.float32, -bound, bound)
    gamma = jax.random.uniform(k4, (Cout,), jnp.float32, 0.5, 1.5)
    beta = jax.random.uniform(k5, (Cout,), jnp.float32, -0.1, 0.1)

    out, act = unet_conv_forward(x, w, b, gamma, beta, stride=stride)
    jax.block_until_ready((out, act))

    assert out.shape == (N, Cout, H // stride, W // stride)
    assert act.shape == (N, Cout, H // stride, W // stride)

    # Tight check against a reference using the same bf16-cast matmul inputs.
    ref_out_b, ref_act_b = unet_conv_reference(
        x, w, b, gamma, beta, stride=stride, cast_dtype=jnp.bfloat16)
    assert jnp.allclose(out, ref_out_b, atol=1e-3, rtol=1e-3)
    assert jnp.allclose(act, ref_act_b, atol=1e-3, rtol=1e-3)

    # Looser sanity check against the pure-f32 reference (bf16 matmul rounding).
    ref_out_f, ref_act_f = unet_conv_reference(x, w, b, gamma, beta, stride=stride)
    assert jnp.allclose(out, ref_out_f, atol=5e-2, rtol=5e-2)
    assert jnp.allclose(act, ref_act_f, atol=5e-2, rtol=5e-2)

    print("KERNEL_OK")
</pallas_src>

<mosaic_0001>
module attributes {stable_mosaic.version = 11 : i64} {
  func.func @_conv_stats_kernel(%arg0: i32, %arg1: i32, %arg2: memref<128x128xbf16, #tpu.memory_space<vmem>>, %arg3: memref<128x128xbf16, #tpu.memory_space<vmem>>, %arg4: memref<128x128xf32, #tpu.memory_space<vmem>>, %arg5: memref<8x128xf32, #tpu.memory_space<vmem>>, %arg6: memref<8x128xf32, #tpu.memory_space<vmem>>, %arg7: memref<128x128xf32, #tpu.memory_space<vmem>>) attributes {dimension_semantics = [#tpu.dimension_semantics<parallel>, #tpu.dimension_semantics<arbitrary>], iteration_bounds = array<i64: 1, 1>, scalar_prefetch = 0 : i64, scratch_operands = 1 : i64, tpu.core_type = #tpu.core_type<tc>, window_params = [{transform_indices = @transform_0, window_bounds = array<i64: 128, 128>}, {transform_indices = @transform_1, window_bounds = array<i64: 128, 128>}, {transform_indices = @transform_2, window_bounds = array<i64: 128, 128>}, {transform_indices = @transform_3, window_bounds = array<i64: 8, 128>}, {transform_indices = @transform_4, window_bounds = array<i64: 8, 128>}]} {
    %c0_i32 = arith.constant 0 : i32
    %0 = arith.cmpi eq, %arg1, %c0_i32 : i32
    %1 = arith.extui %0 : i1 to i32
    %c0_i32_0 = arith.constant 0 : i32
    %2 = arith.cmpi ne, %1, %c0_i32_0 : i32
    scf.if %2 {
      %cst_10 = arith.constant 0.000000e+00 : f32
      %12 = vector.broadcast %cst_10 : f32 to vector<128x128xf32>
      %c0_11 = arith.constant 0 : index
      %c0_12 = arith.constant 0 : index
      %13 = vector.load %arg7[%c0_11, %c0_12] : memref<128x128xf32, #tpu.memory_space<vmem>>, vector<128x128xf32>
      tpu.vector_store %arg7[%c0_11, %c0_12], %12 {strides = array<i32>} : memref<128x128xf32, #tpu.memory_space<vmem>>, vector<128x128xf32>,
    } else {
    }
    %c0 = arith.constant 0 : index
    %c0_1 = arith.constant 0 : index
    %3 = vector.load %arg7[%c0, %c0_1] : memref<128x128xf32, #tpu.memory_space<vmem>>, vector<128x128xf32>
    %c0_2 = arith.constant 0 : index
    %c0_3 = arith.constant 0 : index
    %4 = vector.load %arg2[%c0_2, %c0_3] : memref<128x128xbf16, #tpu.memory_space<vmem>>, vector<128x128xbf16>
    %c0_4 = arith.constant 0 : index
    %c0_5 = arith.constant 0 : index
    %5 = vector.load %arg3[%c0_4, %c0_5] : memref<128x128xbf16, #tpu.memory_space<vmem>>, vector<128x128xbf16>
    %cst = arith.constant dense<0.000000e+00> : vector<128x128xf32>
    %6 = tpu.matmul %4, %5, %cst {dimension_numbers = #tpu.dot_dimension_numbers<[1], [0], [0], [1], [0, 0, 1, 1], [], []>} : vector<128x128xbf16>, vector<128x128xbf16>, vector<128x128xf32> -> vector<128x128xf32>
    %7 = arith.addf %3, %6 : vector<128x128xf32>
    %c0_6 = arith.constant 0 : index
    %c0_7 = arith.constant 0 : index
    %8 = vector.load %arg7[%c0_6, %c0_7] : memref<128x128xf32, #tpu.memory_space<vmem>>, vector<128x128xf32>
    tpu.vector_store %arg7[%c0_6, %c0_7], %7 {strides = array<i32>} : memref<128x128xf32, #tpu.memory_space<vmem>>, vector<128x128xf32>,
    %c0_i32_8 = arith.constant 0 : i32
    %9 = arith.cmpi eq, %arg1, %c0_i32_8 : i32
    %10 = arith.extui %9 : i1 to i32
    %c0_i32_9 = arith.constant 0 : i32
    %11 = arith.cmpi ne, %10, %c0_i32_9 : i32
    scf.if %11 {
      %c0_10 = arith.constant 0 : index
      %c0_11 = arith.constant 0 : index
      %12 = vector.load %arg7[%c0_10, %c0_11] : memref<128x128xf32, #tpu.memory_space<vmem>>, vector<128x128xf32>
      %c0_12 = arith.constant 0 : index
      %c0_13 = arith.constant 0 : index
      %13 = vector.load %arg4[%c0_12, %c0_13] : memref<128x128xf32, #tpu.memory_space<vmem>>, vector<128x128xf32>
      tpu.vector_store %arg4[%c0_12, %c0_13], %12 {strides = array<i32>} : memref<128x128xf32, #tpu.memory_space<vmem>>, vector<128x128xf32>,
      %cst_14 = arith.constant dense<0.000000e+00> : vector<128xf32>
      %14 = vector.multi_reduction <add>, %12, %cst_14 [0] : vector<128x128xf32> to vector<128xf32>
      %15 = vector.shape_cast %14 : vector<128xf32> to vector<1x128xf32>
      %16 = arith.mulf %12, %12 : vector<128x128xf32>
      %cst_15 = arith.constant dense<0.000000e+00> : vector<128xf32>
      %17 = vector.multi_reduction <add>, %16, %cst_15 [0] : vector<128x128xf32> to vector<128xf32>
      %18 = vector.shape_cast %17 : vector<128xf32> to vector<1x128xf32>
      %19 = vector.shape_cast %15 : vector<1x128xf32> to vector<1x128xf32>
      %20 = vector.broadcast %19 : vector<1x128xf32> to vector<8x128xf32>
      %c0_16 = arith.constant 0 : index
      %c0_17 = arith.constant 0 : index
      %21 = vector.load %arg5[%c0_16, %c0_17] : memref<8x128xf32, #tpu.memory_space<vmem>>, vector<8x128xf32>
      tpu.vector_store %arg5[%c0_16, %c0_17], %20 {strides = array<i32>} : memref<8x128xf32, #tpu.memory_space<vmem>>, vector<8x128xf32>,
      %22 = vector.shape_cast %18 : vector<1x128xf32> to vector<1x128xf32>
      %23 = vector.broadcast %22 : vector<1x128xf32> to vector<8x128xf32>
      %c0_18 = arith.constant 0 : index
      %c0_19 = arith.constant 0 : index
      %24 = vector.load %arg6[%c0_18, %c0_19] : memref<8x128xf32, #tpu.memory_space<vmem>>, vector<8x128xf32>
      tpu.vector_store %arg6[%c0_18, %c0_19], %23 {strides = array<i32>} : memref<8x128xf32, #tpu.memory_space<vmem>>, vector<8x128xf32>,
    } else {
    }
    return
  }
  func.func @transform_0(%arg0: i32, %arg1: i32) -> (i32, i32) {
    %c0_i32 = arith.constant 0 : i32
    return %arg0, %arg1 : i32, i32
  }
  func.func @transform_1(%arg0: i32, %arg1: i32) -> (i32, i32) {
    %c0_i32 = arith.constant 0 : i32
    %c0_i32_0 = arith.constant 0 : i32
    return %arg1, %c0_i32 : i32, i32
  }
  func.func @transform_2(%arg0: i32, %arg1: i32) -> (i32, i32) {
    %c0_i32 = arith.constant 0 : i32
    %c0_i32_0 = arith.constant 0 : i32
    return %arg0, %c0_i32 : i32, i32
  }
  func.func @transform_3(%arg0: i32, %arg1: i32) -> (i32, i32) {
    %c0_i32 = arith.constant 0 : i32
    %c0_i32_0 = arith.constant 0 : i32
    return %arg0, %c0_i32 : i32, i32
  }
  func.func @transform_4(%arg0: i32, %arg1: i32) -> (i32, i32) {
    %c0_i32 = arith.constant 0 : i32
    %c0_i32_0 = arith.constant 0 : i32
    return %arg0, %c0_i32 : i32, i32
  }
}

</mosaic_0001>

<bundles_post_ra>
// kernel: tpu_custom_call.1
= control target key start
LH: loop header
LB: loop body
LE: loop exit
PB: predicated region body
PF: predicated region fallthrough
CT: control target
= control target key end

     0   :  { %10 = vsyncpa [#allocation4], 0  ;;  %s820_s0 = inlined_call_operand.hbm [shape: bf16[128,128], index: 0, kind: input, shape index: {}]   ;;  %s821_s1 = inlined_call_operand.hbm [shape: bf16[128,128], index: 1, kind: input, shape index: {}]   ;;  %s822_s2 = inlined_call_operand.hbm [shape: f32[128,128], index: 2, kind: output, shape index: {0}]   ;;  %s823_s3 = inlined_call_operand.hbm [shape: f32[8,128], index: 3, kind: output, shape index: {1}]   ;;  %s824_s4 = inlined_call_operand.hbm [shape: f32[8,128], index: 4, kind: output, shape index: {2}]  }
   0x1   :  { %11 = vsyncpa [#allocation7], 0 }
   0x2   :  { %12 = vsyncpa [#allocation5], 0 }
   0x3   :  { %13 = vsyncpa [#allocation10], 0  ;;  %s701_s15 = smov [#allocation3]   ;;  %s583_s19 = scalar_lea.hbm %s820_s0, 1024 }
   0x4   :  { %s19_s16 = sshll.u32 %s701_s15, 4  ;;  %p584_p0 = scmp.ne.s32.totalorder %s820_s0, %s583_s19  ;;  %s20_s16 = int_to_ptr.vmem [resolvable:$true] %s19_s16 }
   0x5   :  { %p587_p1 = scmp.lt.u32.totalorder %s583_s19, %s820_s0 }
   0x7   :  { %p589_p2 = pnand %p587_p1, %p584_p0 }
   0x9   :  { %592 = shalt.err (!%p589_p2)
}
   0xa   :  { %s593_s24 = scalar_lea.vmem %s20_s16, 1024  ;;  %p598_p4 = scmp.lt.s32.totalorder %s20_s16, %s20_s16 }
   0xb   :  { %p594_p3 = scmp.ne.s32.totalorder %s20_s16, %s593_s24  ;;  %p599_p5 = scmp.lt.s32.totalorder %s593_s24, %s593_s24 }
   0xd   :  { %p600_p6 = por %p599_p5, %p598_p4 }
   0xf   :  { %p601_p7 = pnand %p600_p6, %p594_p3 }
  0x11   :  { %604 = shalt.err (!%p601_p7)
}
  0x12   :  { %s702_s25 = smov 64   ;;  %s703_s26 = smov 4  }
  0x13   :  { %25 = dma.hbm_to_vmem [thread:$0]  %s820_s0, 1024, %s20_s16, [#allocation4], %s702_s25, %s702_s25, %s703_s26  }
  0x14   :  { %s704_s29 = smov [#allocation6]   ;;  %s605_s7 = scalar_lea.hbm %s821_s1, 1024 }
  0x15   :  { %s31_s30 = sshll.u32 %s704_s29, 4  ;;  %p606_p8 = scmp.ne.s32.totalorder %s821_s1, %s605_s7  ;;  %s32_s30 = int_to_ptr.vmem [resolvable:$true] %s31_s30 }
  0x16   :  { %p609_p9 = scmp.lt.u32.totalorder %s605_s7, %s821_s1 }
  0x18   :  { %p611_p10 = pnand %p609_p9, %p606_p8 }
  0x1a   :  { %614 = shalt.err (!%p611_p10)
}
  0x1b   :  { %s615_s12 = scalar_lea.vmem %s32_s30, 1024  ;;  %p620_p12 = scmp.lt.s32.totalorder %s32_s30, %s32_s30 }
  0x1c   :  { %p616_p11 = scmp.ne.s32.totalorder %s32_s30, %s615_s12  ;;  %p621_p13 = scmp.lt.s32.totalorder %s615_s12, %s615_s12 }
  0x1e   :  { %p622_p0 = por %p621_p13, %p620_p12 }
  0x20   :  { %p623_p1 = pnand %p622_p0, %p616_p11 }
  0x22   :  { %626 = shalt.err (!%p623_p1)
}
  0x23   :  { %37 = dma.hbm_to_vmem [thread:$0]  %s821_s1, 1024, %s32_s30, [#allocation7], %s702_s25, %s702_s25, %s703_s26  }
  0x24   :  { %693 = dma.done.wait [#allocation4], 1024  }
  0x25   :  { %694 = vsyncadd [#allocation4], 4294966272 }
  0x26   :  { %695 = dma.done.wait [#allocation7], 1024  }
  0x27   :  { %696 = vsyncadd [#allocation7], 4294966272  ;;  %v567_v0 = vld [vmem:[#allocation6] sm:$0xff]   ;;  %v568_v1 = vld [vmem:[#allocation6 + $0x8] sm:$0xff]   ;;  %s705_s1 = smov [#allocation8]  }
  0x28   :  { %510 = vmatprep.subr.bf16.mxu0 %v567_v0  ;;  %542 = vmatprep.subr.bf16.mxu1 %v567_v0  ;;  %v569_v2 = vld [vmem:[#allocation6 + $0x10] sm:$0xff]   ;;  %v570_v3 = vld [vmem:[#allocation6 + $0x18] sm:$0xff]   ;;  %v575_v4 = vld [vmem:[#allocation3] sm:$0xff]   ;;  %s438_s14 = sshll.u32 %s705_s1, 4  ;;  %s768_s14 = int_to_ptr.vmem [resolvable:$true] %s438_s14 }
  0x29   :  { %511 = vmatpush3.bf16.msra.mxu0 %v567_v0  ;;  %550 = vmatpush3.bf16.msra.mxu1 %v567_v0  ;;  %v571_v5 = vld [vmem:[#allocation6 + $0x20] sm:$0xff]   ;;  %v572_v7 = vld [vmem:[#allocation6 + $0x28] sm:$0xff]   ;;  %v573_v8 = vld [vmem:[#allocation6 + $0x30] sm:$0xff]   ;;  %s627_s15 = scalar_lea.vmem %s768_s14, 2048  ;;  %p632_p3 = scmp.lt.s32.totalorder %s768_s14, %s768_s14 }
  0x2a   :  { %512 = vmatprep.subr.bf16.mxu0 %v568_v1  ;;  %543 = vmatprep.subr.bf16.mxu1 %v568_v1  ;;  %v579_v6 = vld [vmem:[#allocation3 + $0x20] sm:$0xff]   ;;  %v574_v9 = vld [vmem:[#allocation6 + $0x38] sm:$0xff]   ;;  %v576_v10 = vld [vmem:[#allocation3 + $0x8] sm:$0xff]   ;;  %p628_p2 = scmp.ne.s32.totalorder %s768_s14, %s627_s15  ;;  %p633_p4 = scmp.lt.s32.totalorder %s627_s15, %s627_s15 }
  0x2b   :  { %526 = vmatprep.mubr.bf16.mxu0 %v575_v4  ;;  %534 = vmatprep.mubr.bf16.mxu1 %v579_v6  ;;  %v580_v11 = vld [vmem:[#allocation3 + $0x28] sm:$0xff]   ;;  %v577_v12 = vld [vmem:[#allocation3 + $0x10] sm:$0xff]   ;;  %v578_v14 = vld [vmem:[#allocation3 + $0x18] sm:$0xff]  }
  0x2c   :  { %v581_v13 = vld [vmem:[#allocation3 + $0x30] sm:$0xff]   ;;  %v582_v15 = vld [vmem:[#allocation3 + $0x38] sm:$0xff]   ;;  %p634_p5 = por %p633_p4, %p632_p3 }
  0x2d   :  { %513 = vmatpush3.bf16.msra.mxu0 %v568_v1  ;;  %551 = vmatpush3.bf16.msra.mxu1 %v568_v1 }
  0x2e   :  { %514 = vmatprep.subr.bf16.mxu0 %v569_v2  ;;  %544 = vmatprep.subr.bf16.mxu1 %v569_v2  ;;  %p635_p6 = pnand %p634_p5, %p628_p2 }
  0x31   :  { %515 = vmatpush3.bf16.msra.mxu0 %v569_v2  ;;  %552 = vmatpush3.bf16.msra.mxu1 %v569_v2 }
  0x32   :  { %516 = vmatprep.subr.bf16.mxu0 %v570_v3  ;;  %545 = vmatprep.subr.bf16.mxu1 %v570_v3 }
  0x35   :  { %517 = vmatpush3.bf16.msra.mxu0 %v570_v3  ;;  %553 = vmatpush3.bf16.msra.mxu1 %v570_v3 }
  0x36   :  { %518 = vmatprep.subr.bf16.mxu0 %v571_v5  ;;  %546 = vmatprep.subr.bf16.mxu1 %v571_v5 }
  0x39   :  { %519 = vmatpush3.bf16.msra.mxu0 %v571_v5  ;;  %554 = vmatpush3.bf16.msra.mxu1 %v571_v5 }
  0x3a   :  { %520 = vmatprep.subr.bf16.mxu0 %v572_v7  ;;  %547 = vmatprep.subr.bf16.mxu1 %v572_v7 }
  0x3d   :  { %521 = vmatpush3.bf16.msra.mxu0 %v572_v7  ;;  %555 = vmatpush3.bf16.msra.mxu1 %v572_v7 }
  0x3e   :  { %522 = vmatprep.subr.bf16.mxu0 %v573_v8  ;;  %548 = vmatprep.subr.bf16.mxu1 %v573_v8 }
  0x41   :  { %523 = vmatpush3.bf16.msra.mxu0 %v573_v8  ;;  %556 = vmatpush3.bf16.msra.mxu1 %v573_v8 }
  0x42   :  { %524 = vmatprep.subr.bf16.mxu0 %v574_v9  ;;  %549 = vmatprep.subr.bf16.mxu1 %v574_v9 }
  0x45   :  { %525 = vmatpush3.bf16.msra.mxu0 %v574_v9  ;;  %557 = vmatpush3.bf16.msra.mxu1 %v574_v9 }
  0x48   :  { %527 = vmatmul.mubr.bf16.vlgmr.msra.gmra.mrb[0].mxu0 %v576_v10  ;;  %535 = vmatmul.mubr.bf16.vlgmr.msra.gmra.mrb[0].mxu1 %v580_v11 }
  0x49   :  { %530 = vmatprep.mubr.bf16.mxu0 %v577_v12  ;;  %538 = vmatprep.mubr.bf16.mxu1 %v581_v13 }
  0x50   :  { %531 = vmatmul.mubr.bf16.gmra.mrb[4].mxu0 %v578_v14  ;;  %539 = vmatmul.mubr.bf16.gmra.mrb[4].mxu1 %v582_v15 }
 0x11b   :  { %v528_v16 = vpop.f32.mrb[0].mxu0  ;;  %v759_v17 = vpop.f32.mrb[0].mxu1 }
 0x11c   :  { %359 = vst [vmem:[#allocation8 + $0x10] sm:$0xff] %v528_v16  ;;  %v243_v18 = vpop.f32.mrb[1].mxu0  ;;  %367 = vst [vmem:[#allocation8 + $0x50] sm:$0xff] %v759_v17  ;;  %v762_v19 = vpop.f32.mrb[1].mxu1  ;;  %v396_v27 = vmul.f32 %v528_v16, %v528_v16 }
 0x11d   :  { %357 = vst [vmem:[#allocation8] sm:$0xff] %v243_v18  ;;  %v529_v20 = vpop.f32.mrb[2].mxu0  ;;  %365 = vst [vmem:[#allocation8 + $0x40] sm:$0xff] %v762_v19  ;;  %v765_v21 = vpop.f32.mrb[2].mxu1  ;;  %v394_v24 = vmul.f32 %v243_v18, %v243_v18 }
 0x11e   :  { %360 = vst [vmem:[#allocation8 + $0x18] sm:$0xff] %v529_v20  ;;  %v246_v22 = vpop.f32.mrb[3].mxu0  ;;  %368 = vst [vmem:[#allocation8 + $0x58] sm:$0xff] %v765_v21  ;;  %v278_v23 = vpop.f32.mrb[3].mxu1  ;;  %v397_v30 = vmul.f32 %v529_v20, %v529_v20 }
 0x11f   :  { %358 = vst [vmem:[#allocation8 + $0x8] sm:$0xff] %v246_v22  ;;  %v373_v25 = vadd.f32 %v246_v22, %v243_v18  ;;  %v395_v26 = vmul.f32 %v246_v22, %v246_v22  ;;  %366 = vst [vmem:[#allocation8 + $0x48] sm:$0xff] %v278_v23 }
 0x121   :  { %v374_v28 = vadd.f32 %v528_v16, %v373_v25  ;;  %v410_v29 = vadd.f32 %v395_v26, %v394_v24 }
 0x123   :  { %v411_v31 = vadd.f32 %v410_v29, %v396_v27  ;;  %v532_v32 = vpop.f32.mrb[4].mxu0  ;;  %v375_v33 = vadd.f32 %v529_v20, %v374_v28  ;;  %v540_v34 = vpop.f32.mrb[4].mxu1 }
 0x124   :  { %363 = vst [vmem:[#allocation8 + $0x30] sm:$0xff] %v532_v32  ;;  %v259_v35 = vpop.f32.mrb[5].mxu0  ;;  %371 = vst [vmem:[#allocation8 + $0x70] sm:$0xff] %v540_v34  ;;  %v291_v36 = vpop.f32.mrb[5].mxu1 }
 0x125   :  { %361 = vst [vmem:[#allocation8 + $0x20] sm:$0xff] %v259_v35  ;;  %v376_v37 = vadd.f32 %v375_v33, %v259_v35  ;;  %v398_v38 = vmul.f32 %v259_v35, %v259_v35  ;;  %v412_v39 = vadd.f32 %v411_v31, %v397_v30  ;;  %v533_v40 = vpop.f32.mrb[6].mxu0  ;;  %369 = vst [vmem:[#allocation8 + $0x60] sm:$0xff] %v291_v36  ;;  %v541_v41 = vpop.f32.mrb[6].mxu1 }
 0x126   :  { %364 = vst [vmem:[#allocation8 + $0x38] sm:$0xff] %v533_v40  ;;  %v262_v42 = vpop.f32.mrb[7].mxu0  ;;  %372 = vst [vmem:[#allocation8 + $0x78] sm:$0xff] %v541_v41  ;;  %v294_v43 = vpop.f32.mrb[7].mxu1 }
 0x127   :  { %v413_v44 = vadd.f32 %v412_v39, %v398_v38  ;;  %362 = vst [vmem:[#allocation8 + $0x28] sm:$0xff] %v262_v42  ;;  %v377_v45 = vadd.f32 %v376_v37, %v262_v42  ;;  %v399_v46 = vmul.f32 %v262_v42, %v262_v42  ;;  %370 = vst [vmem:[#allocation8 + $0x68] sm:$0xff] %v294_v43 }
 0x128   :  { %638 = shalt.err (!%p635_p6)
}
 0x129   :  { %s639_s18 = scalar_lea.hbm %s822_s2, 2048 }
 0x12a   :  { %p640_p7 = scmp.ne.s32.totalorder %s822_s2, %s639_s18  ;;  %p643_p8 = scmp.lt.u32.totalorder %s639_s18, %s822_s2 }
 0x12c   :  { %p645_p9 = pnand %p643_p8, %p640_p7 }
 0x12e   :  { %648 = shalt.err (!%p645_p9)
}
 0x12f   :  { %s706_s23 = smov 128   ;;  %s707_s24 = smov 8   ;;  %v400_v47 = vmul.f32 %v532_v32, %v532_v32  ;;  %v378_v48 = vadd.f32 %v532_v32, %v377_v45  ;;  %v414_v49 = vadd.f32 %v413_v44, %v399_v46  ;;  %v401_v50 = vmul.f32 %v533_v40, %v533_v40 }
 0x130   :  { %444 = dma.vmem_to_hbm [thread:$0]  %s768_s14, 2048, %s822_s2, [#allocation5], %s706_s23, %s706_s23, %s707_s24   ;;  %v402_v53 = vmul.f32 %v762_v19, %v762_v19  ;;  %v403_v58 = vmul.f32 %v278_v23, %v278_v23  ;;  %v404_v59 = vmul.f32 %v759_v17, %v759_v17  ;;  %v405_v62 = vmul.f32 %v765_v21, %v765_v21 }
 0x131   :  { %v415_v51 = vadd.f32 %v414_v49, %v400_v47  ;;  %v379_v52 = vadd.f32 %v533_v40, %v378_v48  ;;  %v406_v1 = vmul.f32 %v291_v36, %v291_v36  ;;  %v407_v6 = vmul.f32 %v294_v43, %v294_v43  ;;  %s708_s2 = smov [#allocation9]   ;;  %s709_s28 = smov [#allocation11]  }
 0x132   :  { %v408_v7 = vmul.f32 %v540_v34, %v540_v34  ;;  %v409_v10 = vmul.f32 %v541_v41, %v541_v41  ;;  %s451_s27 = sshll.u32 %s708_s2, 4  ;;  %s461_s29 = sshll.u32 %s709_s28, 4  ;;  %s452_s27 = int_to_ptr.vmem [resolvable:$true] %s451_s27  ;;  %s462_s29 = int_to_ptr.vmem [resolvable:$true] %s461_s29 }
 0x133   :  { %v380_v54 = vadd.f32 %v379_v52, %v762_v19  ;;  %v416_v55 = vadd.f32 %v415_v51, %v401_v50  ;;  %s649_s30 = scalar_lea.vmem %s452_s27, 128  ;;  %p654_p11 = scmp.lt.s32.totalorder %s452_s27, %s452_s27 }
 0x134   :  { %p650_p10 = scmp.ne.s32.totalorder %s452_s27, %s649_s30  ;;  %p655_p12 = scmp.lt.s32.totalorder %s649_s30, %s649_s30 }
 0x135   :  { %v417_v56 = vadd.f32 %v416_v55, %v402_v53  ;;  %v381_v57 = vadd.f32 %v380_v54, %v278_v23 }
 0x136   :  { %p656_p13 = por %p655_p12, %p654_p11 }
 0x137   :  { %v382_v60 = vadd.f32 %v759_v17, %v381_v57  ;;  %v418_v61 = vadd.f32 %v417_v56, %v403_v58 }
 0x138   :  { %p657_p0 = pnand %p656_p13, %p650_p10 }
 0x139   :  { %v419_v63 = vadd.f32 %v418_v61, %v404_v59  ;;  %v383_v0 = vadd.f32 %v765_v21, %v382_v60 }
 0x13b   :  { %v384_v2 = vadd.f32 %v383_v0, %v291_v36  ;;  %v420_v3 = vadd.f32 %v419_v63, %v405_v62 }
 0x13d   :  { %v421_v4 = vadd.f32 %v420_v3, %v406_v1  ;;  %v385_v5 = vadd.f32 %v384_v2, %v294_v43 }
 0x13f   :  { %v386_v8 = vadd.f32 %v540_v34, %v385_v5  ;;  %v422_v9 = vadd.f32 %v421_v4, %v407_v6 }
 0x141   :  { %v387_v11 = vadd.f32 %v541_v41, %v386_v8  ;;  %v423_v12 = vadd.f32 %v422_v9, %v408_v7 }
 0x143   :  { %v388_v13 = vrot.slane %v387_v11, 4  ;;  %v424_v14 = vadd.f32 %v423_v12, %v409_v10 }
 0x145   :  { %v425_v15 = vrot.slane %v424_v14, 4  ;;  %v389_v16 = vadd.f32 %v388_v13, %v387_v11 }
 0x147   :  { %v390_v17 = vrot.slane %v389_v16, 2  ;;  %v426_v18 = vadd.f32 %v425_v15, %v424_v14 }
 0x149   :  { %v391_v19 = vadd.f32 %v390_v17, %v389_v16  ;;  %v427_v20 = vrot.slane %v426_v18, 2 }
 0x14b   :  { %v392_v21 = vrot.slane %v391_v19, 1  ;;  %v428_v22 = vadd.f32 %v427_v20, %v426_v18 }
 0x14d   :  { %v393_v23 = vadd.f32 %v392_v21, %v391_v19  ;;  %v429_v24 = vrot.slane %v428_v22, 1 }
 0x14f   :  { %431 = vst [vmem:[#allocation9] sm:$0xff] %v393_v23  ;;  %v430_v25 = vadd.f32 %v429_v24, %v428_v22 }
 0x150   :  { %660 = shalt.err (!%p657_p0)
}
 0x151   :  { %s661_s7 = scalar_lea.hbm %s823_s3, 128 }
 0x152   :  { %p662_p1 = scmp.ne.s32.totalorder %s823_s3, %s661_s7  ;;  %p665_p2 = scmp.lt.u32.totalorder %s661_s7, %s823_s3 }
 0x154   :  { %p667_p3 = pnand %p665_p2, %p662_p1 }
 0x156   :  { %670 = shalt.err (!%p667_p3)
}
 0x157   :  { %454 = dma.vmem_to_hbm [thread:$0]  %s452_s27, 128, %s823_s3, [#allocation10]   ;;  %432 = vst [vmem:[#allocation11] sm:$0xff] %v430_v25 }
 0x158   :  { %s671_s13 = scalar_lea.vmem %s462_s29, 128  ;;  %p676_p5 = scmp.lt.s32.totalorder %s462_s29, %s462_s29 }
 0x159   :  { %p672_p4 = scmp.ne.s32.totalorder %s462_s29, %s671_s13  ;;  %p677_p6 = scmp.lt.s32.totalorder %s671_s13, %s671_s13 }
 0x15b   :  { %p678_p7 = por %p677_p6, %p676_p5 }
 0x15d   :  { %p679_p8 = pnand %p678_p7, %p672_p4 }
 0x15f   :  { %682 = shalt.err (!%p679_p8)
}
 0x160   :  { %s683_s15 = scalar_lea.hbm %s824_s4, 128 }
 0x161   :  { %p684_p9 = scmp.ne.s32.totalorder %s824_s4, %s683_s15  ;;  %p687_p10 = scmp.lt.u32.totalorder %s683_s15, %s824_s4 }
 0x163   :  { %p689_p11 = pnand %p687_p10, %p684_p9 }
 0x165   :  { %692 = shalt.err (!%p689_p11)
}
 0x166   :  { %464 = dma.vmem_to_hbm [thread:$0]  %s462_s29, 128, %s824_s4, [#allocation10]  }
 0x167   :  { %697 = dma.done.wait [#allocation5], 2048  }
 0x168   :  { %698 = vsyncadd [#allocation5], 4294965248 }
 0x169   :  { %699 = dma.done.wait [#allocation10], 256  }
 0x16a   :  { %700 = vsyncadd [#allocation10], 4294967040 }
 0x16b   :  { %474 = vsyncpa [#allocation4], 1 }
 0x16c   :  { %475 = vsyncpa [#allocation7], 1 }
 0x16d   :  { %476 = vsyncpa [#allocation5], 1 }
 0x16e   :  { %477 = vsyncpa [#allocation10], 1 }

</bundles_post_ra>
